<compile_context>
chip_gen: v5e
topology: v5e:2x2
jax: 0.10.0
libtpu: 0.0.40
codegen_flags: <defaults>
</compile_context>

<pallas_src>
import functools
import math
import re

import jax
import jax.numpy as jnp
from jax.experimental import pallas as pl
from jax.experimental.pallas import tpu as pltpu


# ----------------------------------------------------------------------------
# small helpers
# ----------------------------------------------------------------------------
def _round_up(x, m):
    return ((x + m - 1) // m) * m


def _tpu_generation():
    """Best-effort TPU generation (5, 6, 7, ...) from the device kind string."""
    try:
        kind = jax.devices()[0].device_kind.lower()
    except Exception:
        return 0
    m = re.search(r"(\d+)", kind)
    return int(m.group(1)) if m else 0


def _vmem_capacity_bytes(gen):
    try:
        return int(pltpu.get_tpu_info().vmem_capacity_bytes)
    except Exception:
        # v7x has 64 MiB per TensorCore; earlier generations 128 MiB.
        return (64 << 20) if gen >= 7 else (128 << 20)


def _num_tensorcores(gen):
    return 2 if gen >= 7 else 1


# ----------------------------------------------------------------------------
# fused kernel: all four layers in one pallas_call, weights resident in VMEM
# ----------------------------------------------------------------------------
def _mlp_kernel(x_ref,
                w1_ref, b1_ref,
                w2_ref, b2_ref,
                w3_ref, b3_ref,
                w4_ref, b4_ref,
                o_ref, *, hidden_dtype):
    # Matmuls run in the weights' dtype (bf16) on the MXU.  On v6e/v7x the
    # bias-add / ReLU path stays in bf16 (hidden_dtype=bf16, native VPU bf16);
    # on v5e hidden_dtype is f32 (no bf16 VALU).  The final layer always
    # accumulates / bias-adds in f32 before casting to the output dtype.
    cdt = w1_ref.dtype
    x = x_ref[...].astype(cdt)          # no-op if the caller already passes bf16

    # fc1 + ReLU
    h = jnp.dot(x, w1_ref[...], preferred_element_type=hidden_dtype)
    h = jnp.maximum(h + b1_ref[...], 0).astype(cdt)

    # fc2 + ReLU
    h = jnp.dot(h, w2_ref[...], preferred_element_type=hidden_dtype)
    h = jnp.maximum(h + b2_ref[...], 0).astype(cdt)

    # fc3 (no activation — matches the PyTorch forward)
    h = jnp.dot(h, w3_ref[...], preferred_element_type=hidden_dtype)
    h = (h + b3_ref[...]).astype(cdt)

    # out projection (f32 accumulate + f32 bias)
    y = jnp.dot(h, w4_ref[...], preferred_element_type=jnp.float32)
    o_ref[...] = (y + b4_ref[...]).astype(o_ref.dtype)


# ----------------------------------------------------------------------------
# fallback kernel: one tiled linear layer (used when weights can't be resident)
# ----------------------------------------------------------------------------
def _linear_kernel(x_ref, w_ref, b_ref, o_ref, *, activate):
    cdt = w_ref.dtype
    y = jnp.dot(x_ref[...].astype(cdt), w_ref[...],
                preferred_element_type=jnp.float32)
    y = y + b_ref[...].astype(jnp.float32)
    if activate:
        y = jnp.maximum(y, 0.0)
    o_ref[...] = y.astype(o_ref.dtype)


def _linear(x, w, b, *, activate, out_dtype, batch_tile, n_tile, vmem_limit):
    B, K = x.shape
    N = w.shape[1]
    grid = (pl.cdiv(B, batch_tile), pl.cdiv(N, n_tile))

    flops = 2 * B * K * N
    bytes_accessed = (B * K * jnp.dtype(x.dtype).itemsize
                      + K * N * jnp.dtype(w.dtype).itemsize
                      + N * jnp.dtype(b.dtype).itemsize
                      + B * N * jnp.dtype(out_dtype).itemsize)

    return pl.pallas_call(
        functools.partial(_linear_kernel, activate=activate),
        out_shape=jax.ShapeDtypeStruct((B, N), out_dtype),
        grid_spec=pltpu.PrefetchScalarGridSpec(
            num_scalar_prefetch=0,
            grid=grid,
            in_specs=[
                pl.BlockSpec((batch_tile, K), lambda i, j: (i, 0)),
                pl.BlockSpec((K, n_tile), lambda i, j: (0, j)),
                pl.BlockSpec((1, n_tile), lambda i, j: (0, j)),
            ],
            out_specs=pl.BlockSpec((batch_tile, n_tile), lambda i, j: (i, j)),
        ),
        compiler_params=pltpu.CompilerParams(
            dimension_semantics=("parallel", "parallel"),
            vmem_limit_bytes=int(vmem_limit)),
        cost_estimate=pl.CostEstimate(flops=int(flops), transcendentals=0,
                                      bytes_accessed=int(bytes_accessed)),
    )(x, w, b)


def _unfused_forward(x, weights, *, param_dtype, out_dtype, vmem_cap):
    """Layer-by-layer tiled path: guard for widths whose resident-weight
    footprint does not fit the fused kernel's VMEM budget."""
    w1p, b1p, w2p, b2p, w3p, b3p, w4p, b4p = weights
    layers = ((w1p, b1p, True), (w2p, b2p, True), (w3p, b3p, False),
              (w4p, b4p, False))
    B = x.shape[0]

    h = x
    for idx, (w, b, act) in enumerate(layers):
        last = idx == len(layers) - 1
        K, N = w.shape
        n_tile = min(N, 512)
        layer_out_dtype = out_dtype if last else param_dtype
        x_isz = jnp.dtype(h.dtype).itemsize
        o_isz = jnp.dtype(layer_out_dtype).itemsize
        w_isz = jnp.dtype(w.dtype).itemsize

        def need(t):
            return (2 * t * K * x_isz              # double-buffered input blocks
                    + 2 * K * n_tile * w_isz       # double-buffered weight blocks
                    + 2 * n_tile * jnp.dtype(b.dtype).itemsize
                    + 2 * t * n_tile * o_isz       # double-buffered output blocks
                    + 3 * t * n_tile * 4)          # live f32 intermediates

        bt = 8
        for t in (512, 256, 128, 64, 32, 16, 8):
            if need(t) <= vmem_cap:
                bt = t
                break
        # TODO(synk): add a K-dimension grid axis with an f32 accumulator for
        # layers whose full-K slab still exceeds the budget at bt == 8.
        bt = min(bt, _round_up(B, 8))
        if bt >= B:
            bt = B                                  # single full-array block
        vmem_limit = min(max(int(1.25 * need(max(bt, 8))) + (4 << 20), 16 << 20),
                         vmem_cap)
        h = _linear(h, w, b, activate=act, out_dtype=layer_out_dtype,
                    batch_tile=bt, n_tile=n_tile, vmem_limit=vmem_limit)
    return h


# ----------------------------------------------------------------------------
# public wrapper
# ----------------------------------------------------------------------------
def mlp_forward(x, params, *, batch_tile=None, param_dtype=jnp.bfloat16,
                fused=None):
    """Forward pass of the 4-layer MLP.

    x:      [B, input_dim] (any float dtype; bf16 input halves the x DMA)
    params: ((w1,b1),(w2,b2),(w3,b3),(w4,b4)); w_i stored as [in, out]
            (transpose of PyTorch nn.Linear.weight), b_i as [1, out].
    fused:  None = auto (fused when the resident-weight design fits VMEM),
            True / False to force a path.
    """
    (w1, b1), (w2, b2), (w3, b3), (w4, b4) = params
    B, in_dim = x.shape
    h1, h2, h3 = w1.shape[1], w2.shape[1], w3.shape[1]
    out_dim = w4.shape[1]

    gen = _tpu_generation()
    capacity = _vmem_capacity_bytes(gen)
    vmem_cap = int(0.80 * capacity)          # leave headroom for compiler scratch
    num_tc = _num_tensorcores(gen)
    # v5e (and older) lack a bf16 VPU: keep the elementwise path in f32 there.
    hidden_dtype = param_dtype if gen >= 6 else jnp.float32

    LANE = 128
    h1_p, h2_p, h3_p = (_round_up(d, LANE) for d in (h1, h2, h3))
    out_p = _round_up(out_dim, LANE)

    def pad2(a, r, c, dt):
        return jnp.pad(a, ((0, r - a.shape[0]), (0, c - a.shape[1]))).astype(dt)

    # One-time lane-dense weight/bias padding (zero rows/cols and zero biases
    # are mathematically inert through relu/matmul).  x itself is never padded
    # or copied in the wrapper.
    w1p = pad2(w1, in_dim, h1_p, param_dtype)
    w2p = pad2(w2, h1_p, h2_p, param_dtype)
    w3p = pad2(w3, h2_p, h3_p, param_dtype)
    w4p = pad2(w4, h3_p, out_p, param_dtype)
    b1p = pad2(b1, 1, h1_p, hidden_dtype)
    b2p = pad2(b2, 1, h2_p, hidden_dtype)
    b3p = pad2(b3, 1, h3_p, hidden_dtype)
    b4p = pad2(b4, 1, out_p, jnp.float32)     # final bias-add stays f32

    weights = (w1p, b1p, w2p, b2p, w3p, b3p, w4p, b4p)
    bytes_w = int(sum(int(a.size) * a.dtype.itemsize for a in weights))

    x_isz = jnp.dtype(x.dtype).itemsize
    o_isz = jnp.dtype(x.dtype).itemsize
    h_isz = jnp.dtype(hidden_dtype).itemsize
    h_max = max(h1_p, h2_p, h3_p, out_p)
    B_up = _round_up(B, 8)

    def fused_vmem_need(tile):
        return (2 * tile * in_dim * x_isz       # double-buffered x blocks
                + 2 * tile * out_p * o_isz      # double-buffered out blocks
                + bytes_w                       # Buffered(1): single resident copy
                + 4 * tile * h_max * h_isz      # live intermediates
                + tile * in_dim * 2)            # bf16 copy of x inside the kernel

    # ---- batch tile from the VMEM budget (prefer fat tiles: 512-1024 rows).
    if batch_tile is None:
        max_tile = 512 if num_tc >= 2 else 1024
        for t in (1024, 512, 256, 128, 64, 32, 16, 8):
            if t > max_tile:
                continue
            tt = min(t, B_up)
            if fused_vmem_need(tt) <= vmem_cap:
                batch_tile = tt
                break
    else:
        batch_tile = min(_round_up(batch_tile, 8), B_up)
        if fused_vmem_need(batch_tile) > vmem_cap:
            batch_tile = None

    use_fused = (batch_tile is not None) if fused is None else bool(fused)
    if use_fused and batch_tile is None:
        batch_tile = min(B_up, 256)             # forced fused path: best effort

    if use_fused:
        # v7x has 2 TensorCores: make sure mid-size batches give both work.
        if num_tc >= 2 and B > 128 and pl.cdiv(B, batch_tile) < num_tc:
            batch_tile = max(8, _round_up(pl.cdiv(B, num_tc), 8))
        if batch_tile >= B:
            batch_tile = B                      # single full-array block (legal layout)

        grid = (pl.cdiv(B, batch_tile),)        # ragged last block handled by Pallas

        def resident(shape):
            # Grid-invariant block: whole array, single-buffered (DMA'd once).
            return pl.BlockSpec(shape, lambda i: (0,) * len(shape),
                                pipeline_mode=pl.Buffered(1))

        flops = 2 * B * (in_dim * h1_p + h1_p * h2_p + h2_p * h3_p + h3_p * out_p)
        bytes_accessed = B * in_dim * x_isz + B * out_p * o_isz + bytes_w
        cost = pl.CostEstimate(flops=int(flops), transcendentals=0,
                               bytes_accessed=int(bytes_accessed))

        # Generation-aware VMEM limit: ~25% headroom, never below the working
        # set, never above ~95% of physical capacity.
        need = fused_vmem_need(batch_tile)
        cap_hi = int(0.95 * capacity)
        vmem_limit = max(int(1.25 * need) + (2 << 20), 16 << 20)
        if vmem_limit > cap_hi:
            vmem_limit = max(cap_hi, need)

        out = pl.pallas_call(
            functools.partial(_mlp_kernel, hidden_dtype=hidden_dtype),
            out_shape=jax.ShapeDtypeStruct((B, out_p), x.dtype),
            grid_spec=pltpu.PrefetchScalarGridSpec(
                num_scalar_prefetch=0,
                grid=grid,
                in_specs=[
                    pl.BlockSpec((batch_tile, in_dim), lambda i: (i, 0)),
                    resident(w1p.shape), resident(b1p.shape),
                    resident(w2p.shape), resident(b2p.shape),
                    resident(w3p.shape), resident(b3p.shape),
                    resident(w4p.shape), resident(b4p.shape),
                ],
                out_specs=pl.BlockSpec((batch_tile, out_p), lambda i: (i, 0)),
            ),
            compiler_params=pltpu.CompilerParams(
                dimension_semantics=("parallel",),
                vmem_limit_bytes=int(vmem_limit)),
            cost_estimate=cost,
        )(x, *weights)
    else:
        out = _unfused_forward(x, weights, param_dtype=param_dtype,
                               out_dtype=x.dtype, vmem_cap=vmem_cap)

    if out_p != out_dim:
        out = out[:, :out_dim]
    return out


# ----------------------------------------------------------------------------
# init + reference
# ----------------------------------------------------------------------------
def init_linear(key, in_dim, out_dim):
    """Deterministic init mimicking nn.Linear defaults (uniform +/- 1/sqrt(in))."""
    kw, kb = jax.random.split(key)
    bound = 1.0 / math.sqrt(in_dim)
    # stored as [in_dim, out_dim] (transposed vs. PyTorch's [out, in])
    w = jax.random.uniform(kw, (in_dim, out_dim), jnp.float32, -bound, bound)
    b = jax.random.uniform(kb, (1, out_dim), jnp.float32, -bound, bound)
    return w, b


def reference_mlp(x, params):
    (w1, b1), (w2, b2), (w3, b3), (w4, b4) = params
    h = jax.nn.relu(x @ w1 + b1)
    h = jax.nn.relu(h @ w2 + b2)
    h = h @ w3 + b3            # fc3: no activation (matches the PyTorch module)
    return h @ w4 + b4


if __name__ == "__main__":
    # Small shapes consistent with the module: input_dim, args.hidden_dim, out_dim.
    batch = 16
    input_dim = 32
    hidden_dim = 32
    out_dim = 16

    root = jax.random.PRNGKey(0)
    kx, k1, k2, k3, k4 = jax.random.split(root, 5)

    x = jax.random.normal(kx, (batch, input_dim), jnp.float32)
    params = (
        init_linear(k1, input_dim, hidden_dim),   # fc1
        init_linear(k2, hidden_dim, hidden_dim),  # fc2
        init_linear(k3, hidden_dim, hidden_dim),  # fc3
        init_linear(k4, hidden_dim, out_dim),     # out
    )

    y_ref = reference_mlp(x, params)

    # Fused path (weights resident in VMEM, Buffered(1)).
    y = jax.block_until_ready(mlp_forward(x, params))
    assert y.shape == (batch, out_dim)
    # bf16 matmul operands (and bf16 elementwise on v6e/v7x) vs f32 reference.
    assert jnp.allclose(y, y_ref, atol=3e-2, rtol=3e-2)

    # Also exercise the tiled layer-by-layer fallback (used for very wide layers).
    y_unfused = jax.block_until_ready(mlp_forward(x, params, fused=False))
    assert y_unfused.shape == (batch, out_dim)
    assert jnp.allclose(y_unfused, y_ref, atol=3e-2, rtol=3e-2)

    print("KERNEL_OK")
</pallas_src>

<mosaic_0001>
module attributes {stable_mosaic.version = 11 : i64} {
  func.func @_mlp_kernel(%arg0: i32, %arg1: memref<16x32xf32, #tpu.memory_space<vmem>>, %arg2: memref<32x128xbf16, #tpu.memory_space<vmem>>, %arg3: memref<1x128xf32, #tpu.memory_space<vmem>>, %arg4: memref<128x128xbf16, #tpu.memory_space<vmem>>, %arg5: memref<1x128xf32, #tpu.memory_space<vmem>>, %arg6: memref<128x128xbf16, #tpu.memory_space<vmem>>, %arg7: memref<1x128xf32, #tpu.memory_space<vmem>>, %arg8: memref<128x128xbf16, #tpu.memory_space<vmem>>, %arg9: memref<1x128xf32, #tpu.memory_space<vmem>>, %arg10: memref<16x128xf32, #tpu.memory_space<vmem>>) attributes {dimension_semantics = [#tpu.dimension_semantics<parallel>], iteration_bounds = array<i64: 1>, scalar_prefetch = 0 : i64, scratch_operands = 0 : i64, tpu.core_type = #tpu.core_type<tc>, window_params = [{transform_indices = @transform_0, window_bounds = array<i64: 16, 32>}, {pipeline_mode = #tpu.pipeline_mode<synchronous>, transform_indices = @transform_1, window_bounds = array<i64: 32, 128>}, {pipeline_mode = #tpu.pipeline_mode<synchronous>, transform_indices = @transform_2, window_bounds = array<i64: 1, 128>}, {pipeline_mode = #tpu.pipeline_mode<synchronous>, transform_indices = @transform_3, window_bounds = array<i64: 128, 128>}, {pipeline_mode = #tpu.pipeline_mode<synchronous>, transform_indices = @transform_4, window_bounds = array<i64: 1, 128>}, {pipeline_mode = #tpu.pipeline_mode<synchronous>, transform_indices = @transform_5, window_bounds = array<i64: 128, 128>}, {pipeline_mode = #tpu.pipeline_mode<synchronous>, transform_indices = @transform_6, window_bounds = array<i64: 1, 128>}, {pipeline_mode = #tpu.pipeline_mode<synchronous>, transform_indices = @transform_7, window_bounds = array<i64: 128, 128>}, {pipeline_mode = #tpu.pipeline_mode<synchronous>, transform_indices = @transform_8, window_bounds = array<i64: 1, 128>}, {transform_indices = @transform_9, window_bounds = array<i64: 16, 128>}]} {
    %c0 = arith.constant 0 : index
    %c0_0 = arith.constant 0 : index
    %0 = vector.load %arg1[%c0, %c0_0] : memref<16x32xf32, #tpu.memory_space<vmem>>, vector<16x32xf32>
    %1 = arith.truncf %0 : vector<16x32xf32> to vector<16x32xbf16>
    %c0_1 = arith.constant 0 : index
    %c0_2 = arith.constant 0 : index
    %2 = vector.load %arg2[%c0_1, %c0_2] : memref<32x128xbf16, #tpu.memory_space<vmem>>, vector<32x128xbf16>
    %cst = arith.constant dense<0.000000e+00> : vector<16x128xf32>
    %3 = tpu.matmul %1, %2, %cst {dimension_numbers = #tpu.dot_dimension_numbers<[1], [0], [0], [1], [0, 0, 1, 1], [], []>} : vector<16x32xbf16>, vector<32x128xbf16>, vector<16x128xf32> -> vector<16x128xf32>
    %c0_3 = arith.constant 0 : index
    %c0_4 = arith.constant 0 : index
    %4 = vector.load %arg3[%c0_3, %c0_4] : memref<1x128xf32, #tpu.memory_space<vmem>>, vector<1x128xf32>
    %5 = vector.broadcast %4 : vector<1x128xf32> to vector<16x128xf32>
    %6 = arith.addf %3, %5 : vector<16x128xf32>
    %cst_5 = arith.constant 0.000000e+00 : f32
    %7 = vector.broadcast %cst_5 : f32 to vector<16x128xf32>
    %8 = arith.maximumf %6, %7 : vector<16x128xf32>
    %9 = arith.truncf %8 : vector<16x128xf32> to vector<16x128xbf16>
    %c0_6 = arith.constant 0 : index
    %c0_7 = arith.constant 0 : index
    %10 = vector.load %arg4[%c0_6, %c0_7] : memref<128x128xbf16, #tpu.memory_space<vmem>>, vector<128x128xbf16>
    %cst_8 = arith.constant dense<0.000000e+00> : vector<16x128xf32>
    %11 = tpu.matmul %9, %10, %cst_8 {dimension_numbers = #tpu.dot_dimension_numbers<[1], [0], [0], [1], [0, 0, 1, 1], [], []>} : vector<16x128xbf16>, vector<128x128xbf16>, vector<16x128xf32> -> vector<16x128xf32>
    %c0_9 = arith.constant 0 : index
    %c0_10 = arith.constant 0 : index
    %12 = vector.load %arg5[%c0_9, %c0_10] : memref<1x128xf32, #tpu.memory_space<vmem>>, vector<1x128xf32>
    %13 = vector.broadcast %12 : vector<1x128xf32> to vector<16x128xf32>
    %14 = arith.addf %11, %13 : vector<16x128xf32>
    %cst_11 = arith.constant 0.000000e+00 : f32
    %15 = vector.broadcast %cst_11 : f32 to vector<16x128xf32>
    %16 = arith.maximumf %14, %15 : vector<16x128xf32>
    %17 = arith.truncf %16 : vector<16x128xf32> to vector<16x128xbf16>
    %c0_12 = arith.constant 0 : index
    %c0_13 = arith.constant 0 : index
    %18 = vector.load %arg6[%c0_12, %c0_13] : memref<128x128xbf16, #tpu.memory_space<vmem>>, vector<128x128xbf16>
    %cst_14 = arith.constant dense<0.000000e+00> : vector<16x128xf32>
    %19 = tpu.matmul %17, %18, %cst_14 {dimension_numbers = #tpu.dot_dimension_numbers<[1], [0], [0], [1], [0, 0, 1, 1], [], []>} : vector<16x128xbf16>, vector<128x128xbf16>, vector<16x128xf32> -> vector<16x128xf32>
    %c0_15 = arith.constant 0 : index
    %c0_16 = arith.constant 0 : index
    %20 = vector.load %arg7[%c0_15, %c0_16] : memref<1x128xf32, #tpu.memory_space<vmem>>, vector<1x128xf32>
    %21 = vector.broadcast %20 : vector<1x128xf32> to vector<16x128xf32>
    %22 = arith.addf %19, %21 : vector<16x128xf32>
    %23 = arith.truncf %22 : vector<16x128xf32> to vector<16x128xbf16>
    %c0_17 = arith.constant 0 : index
    %c0_18 = arith.constant 0 : index
    %24 = vector.load %arg8[%c0_17, %c0_18] : memref<128x128xbf16, #tpu.memory_space<vmem>>, vector<128x128xbf16>
    %cst_19 = arith.constant dense<0.000000e+00> : vector<16x128xf32>
    %25 = tpu.matmul %23, %24, %cst_19 {dimension_numbers = #tpu.dot_dimension_numbers<[1], [0], [0], [1], [0, 0, 1, 1], [], []>} : vector<16x128xbf16>, vector<128x128xbf16>, vector<16x128xf32> -> vector<16x128xf32>
    %c0_20 = arith.constant 0 : index
    %c0_21 = arith.constant 0 : index
    %26 = vector.load %arg9[%c0_20, %c0_21] : memref<1x128xf32, #tpu.memory_space<vmem>>, vector<1x128xf32>
    %27 = vector.broadcast %26 : vector<1x128xf32> to vector<16x128xf32>
    %28 = arith.addf %25, %27 : vector<16x128xf32>
    %c0_22 = arith.constant 0 : index
    %c0_23 = arith.constant 0 : index
    %29 = vector.load %arg10[%c0_22, %c0_23] : memref<16x128xf32, #tpu.memory_space<vmem>>, vector<16x128xf32>
    tpu.vector_store %arg10[%c0_22, %c0_23], %28 {strides = array<i32>} : memref<16x128xf32, #tpu.memory_space<vmem>>, vector<16x128xf32>,
    return
  }
  func.func @transform_0(%arg0: i32) -> (i32, i32) {
    %c0_i32 = arith.constant 0 : i32
    %c0_i32_0 = arith.constant 0 : i32
    return %arg0, %c0_i32 : i32, i32
  }
  func.func @transform_1(%arg0: i32) -> (i32, i32) {
    %c0_i32 = arith.constant 0 : i32
    %c0_i32_0 = arith.constant 0 : i32
    %c0_i32_1 = arith.constant 0 : i32
    return %c0_i32, %c0_i32_0 : i32, i32
  }
  func.func @transform_2(%arg0: i32) -> (i32, i32) {
    %c0_i32 = arith.constant 0 : i32
    %c0_i32_0 = arith.constant 0 : i32
    %c0_i32_1 = arith.constant 0 : i32
    return %c0_i32, %c0_i32_0 : i32, i32
  }
  func.func @transform_3(%arg0: i32) -> (i32, i32) {
    %c0_i32 = arith.constant 0 : i32
    %c0_i32_0 = arith.constant 0 : i32
    %c0_i32_1 = arith.constant 0 : i32
    return %c0_i32, %c0_i32_0 : i32, i32
  }
  func.func @transform_4(%arg0: i32) -> (i32, i32) {
    %c0_i32 = arith.constant 0 : i32
    %c0_i32_0 = arith.constant 0 : i32
    %c0_i32_1 = arith.constant 0 : i32
    return %c0_i32, %c0_i32_0 : i32, i32
  }
  func.func @transform_5(%arg0: i32) -> (i32, i32) {
    %c0_i32 = arith.constant 0 : i32
    %c0_i32_0 = arith.constant 0 : i32
    %c0_i32_1 = arith.constant 0 : i32
    return %c0_i32, %c0_i32_0 : i32, i32
  }
  func.func @transform_6(%arg0: i32) -> (i32, i32) {
    %c0_i32 = arith.constant 0 : i32
    %c0_i32_0 = arith.constant 0 : i32
    %c0_i32_1 = arith.constant 0 : i32
    return %c0_i32, %c0_i32_0 : i32, i32
  }
  func.func @transform_7(%arg0: i32) -> (i32, i32) {
    %c0_i32 = arith.constant 0 : i32
    %c0_i32_0 = arith.constant 0 : i32
    %c0_i32_1 = arith.constant 0 : i32
    return %c0_i32, %c0_i32_0 : i32, i32
  }
  func.func @transform_8(%arg0: i32) -> (i32, i32) {
    %c0_i32 = arith.constant 0 : i32
    %c0_i32_0 = arith.constant 0 : i32
    %c0_i32_1 = arith.constant 0 : i32
    return %c0_i32, %c0_i32_0 : i32, i32
  }
  func.func @transform_9(%arg0: i32) -> (i32, i32) {
    %c0_i32 = arith.constant 0 : i32
    %c0_i32_0 = arith.constant 0 : i32
    return %arg0, %c0_i32 : i32, i32
  }
}

</mosaic_0001>

<bundles_post_ra>
// kernel: tpu_custom_call.1
= control target key start
LH: loop header
LB: loop body
LE: loop exit
PB: predicated region body
PF: predicated region fallthrough
CT: control target
= control target key end

     0   :  { %14 = vsyncpa [#allocation3], 0  ;;  %s834_s0 = inlined_call_operand.hbm [shape: f32[16,32], index: 0, kind: input, shape index: {}]   ;;  %s835_s1 = inlined_call_operand.hbm [shape: bf16[32,128], index: 1, kind: input, shape index: {}]   ;;  %s836_s2 = inlined_call_operand.vmem [shape: f32[1,128], index: 2, kind: input, shape index: {}]   ;;  %s837_s3 = inlined_call_operand.hbm [shape: bf16[128,128], index: 3, kind: input, shape index: {}]   ;;  %s838_s4 = inlined_call_operand.vmem [shape: f32[1,128], index: 4, kind: input, shape index: {}]   ;;  %s839_s5 = inlined_call_operand.hbm [shape: bf16[128,128], index: 5, kind: input, shape index: {}]   ;;  %s840_s6 = inlined_call_operand.vmem [shape: f32[1,128], index: 6, kind: input, shape index: {}]   ;;  %s841_s7 = inlined_call_operand.hbm [shape: bf16[128,128], index: 7, kind: input, shape index: {}]   ;;  %s842_s8 = inlined_call_operand.vmem [shape: f32[1,128], index: 8, kind: input, shape index: {}]   ;;  %s843_s9 = inlined_call_operand.hbm [shape: f32[16,128], index: 9, kind: output, shape index: {}]  }
   0x1   :  { %15 = vsyncpa [#allocation6], 0 }
   0x2   :  { %16 = vsyncpa [#allocation9], 0  ;;  %s35_s11 = sshll.u32 %s835_s1, 4  ;;  %s36_s11 = int_to_ptr.hbm [resolvable:$true] %s35_s11 }
   0x3   :  { %17 = vsyncpa [#allocation4], 0  ;;  %s726_s12 = smov [#allocation5]   ;;  %s65_s16 = sshll.u32 %s839_s5, 4  ;;  %s66_s16 = int_to_ptr.hbm [resolvable:$true] %s65_s16 }
   0x4   :  { %s37_s13 = sshll.u32 %s726_s12, 4  ;;  %s727_s17 = smov 64   ;;  %s38_s13 = int_to_ptr.vmem [resolvable:$true] %s37_s13 }
   0x5   :  { %s728_s18 = smov 4   ;;  %s729_s19 = smov [#allocation8]  }
   0x6   :  { %43 = dma.hbm_to_vmem [thread:$0]  %s36_s11, 256, %s38_s13, [#allocation6], %s727_s17, %s727_s17, %s728_s18  }
   0x7   :  { %s67_s20 = sshll.u32 %s729_s19, 4  ;;  %s22_s22 = sshll.u32 %s834_s0, 4  ;;  %s68_s20 = int_to_ptr.vmem [resolvable:$true] %s67_s20  ;;  %s23_s22 = int_to_ptr.hbm [resolvable:$true] %s22_s22 }
   0x8   :  { %73 = dma.hbm_to_vmem [thread:$0]  %s66_s16, 1024, %s68_s20, [#allocation9], %s727_s17, %s727_s17, %s728_s18  }
   0x9   :  { %s730_s5 = smov [#allocation2]   ;;  %s50_s26 = sshll.u32 %s837_s3, 4  ;;  %s51_s26 = int_to_ptr.hbm [resolvable:$true] %s50_s26 }
   0xa   :  { %s24_s23 = sshll.u32 %s730_s5, 4  ;;  %s731_s27 = smov 128   ;;  %s25_s23 = int_to_ptr.vmem [resolvable:$true] %s24_s23 }
   0xb   :  { %s732_s28 = smov 8   ;;  %s733_s0 = smov [#allocation7]  }
   0xc   :  { %30 = dma.hbm_to_vmem [thread:$0]  %s23_s22, 256, %s25_s23, [#allocation3], %s731_s27, %s731_s27, %s732_s28  }
   0xd   :  { %s52_s29 = sshll.u32 %s733_s0, 4  ;;  %s80_s11 = sshll.u32 %s841_s7, 4  ;;  %s53_s29 = int_to_ptr.vmem [resolvable:$true] %s52_s29  ;;  %s81_s11 = int_to_ptr.hbm [resolvable:$true] %s80_s11 }
   0xe   :  { %58 = dma.hbm_to_vmem [thread:$0]  %s51_s26, 1024, %s53_s29, [#allocation6], %s727_s17, %s727_s17, %s728_s18  }
   0xf   :  { %s734_s3 = smov [#allocation10]  }
  0x10   :  { %s82_s12 = sshll.u32 %s734_s3, 4  ;;  %s83_s12 = int_to_ptr.vmem [resolvable:$true] %s82_s12 }
  0x11   :  { %88 = dma.hbm_to_vmem [thread:$0]  %s81_s11, 1024, %s83_s12, [#allocation9], %s727_s17, %s727_s17, %s728_s18  }
  0x12   :  { %718 = dma.done.wait [#allocation3], 256  }
  0x13   :  { %719 = vsyncadd [#allocation3], 4294967040 }
  0x14   :  { %720 = dma.done.wait [#allocation6], 1280  }
  0x15   :  { %721 = vsyncadd [#allocation6], 4294966016 }
  0x16   :  { %722 = dma.done.wait [#allocation9], 2048  }
  0x17   :  { %723 = vsyncadd [#allocation9], 4294965248  ;;  %v535_v0 = vld [vmem:[#allocation5 + $0x8] sm:$0xff]  ;;  %v534_v1 = vld [vmem:[#allocation5] sm:$0xff]  ;;  %vm135_vm0 = vcmask 261120   ;;  %s735_s18 = smov [#allocation11]  }
  0x18   :  { %v543_v2 = vld [vmem:[#allocation7 + $0x38] sm:$0xff]  ;;  %145 = vmatpush.bf16.msra.mxu0 %v535_v0  ;;  %v112_v3 = vld [vmem:[#allocation2] sm:$0xff]  ;;  %v113_v4 = vld [vmem:[#allocation2 + $0x8] sm:$0xff]  ;;  %s412_s19 = sshll.u32 %s735_s18, 4  ;;  %s414_s1 = sshll.u32 %s843_s9, 4  ;;  %s413_s19 = int_to_ptr.vmem [resolvable:$true] %s412_s19  ;;  %s415_s1 = int_to_ptr.hbm [resolvable:$true] %s414_s1 }
  0x19   :  { %224 = vmatpush.bf16.msra.mxu1 %v543_v2  ;;  %v542_v5 = vld [vmem:[#allocation7 + $0x30] sm:$0xff]  ;;  %v114_v6 = vpack.c.bf16 %v113_v4, %v112_v3  ;;  %v541_v7 = vld [vmem:[#allocation7 + $0x28] sm:$0xff]  ;;  %v540_v8 = vld [vmem:[#allocation7 + $0x20] sm:$0xff] }
  0x1a   :  { %v539_v9 = vld [vmem:[#allocation7 + $0x18] sm:$0xff]  ;;  %v538_v10 = vld [vmem:[#allocation7 + $0x10] sm:$0xff]  ;;  %v537_v11 = vld [vmem:[#allocation7 + $0x8] sm:$0xff] }
  0x1b   :  { %v536_v12 = vld [vmem:[#allocation7] sm:$0xff]  ;;  %v551_v13 = vld [vmem:[#allocation8 + $0x38] sm:$0xff]  ;;  %v550_v14 = vld [vmem:[#allocation8 + $0x30] sm:$0xff] }
  0x1c   :  { %146 = vmatpush.bf16.msra.mxu0 %v534_v1  ;;  %309 = vmatpush.bf16.msra.mxu2 %v551_v13  ;;  %v549_v15 = vld [vmem:[#allocation8 + $0x28] sm:$0xff]  ;;  %v548_v16 = vld [vmem:[#allocation8 + $0x20] sm:$0xff]  ;;  %v547_v25 = vld [vmem:[#allocation8 + $0x18] sm:$0xff] }
  0x1d   :  { %225 = vmatpush.bf16.msra.mxu1 %v542_v5  ;;  %v570_v18 = vld [vmem:[%s836_s2] ss:$0 sm:$0xff]  ;;  %v546_v26 = vld [vmem:[#allocation8 + $0x10] sm:$0xff]  ;;  %v545_v27 = vld [vmem:[#allocation8 + $0x8] sm:$0xff] }
  0x1e   :  { %v544_v28 = vld [vmem:[#allocation8] sm:$0xff]  ;;  %v559_v29 = vld [vmem:[#allocation10 + $0x38] sm:$0xff]  ;;  %v558_v30 = vld [vmem:[#allocation10 + $0x30] sm:$0xff] }
  0x1f   :  { %437 = vmatmul.msk.bf16.vlgmr.msra.gmra.mxu0 %vm135_vm0, %v114_v6  ;;  %392 = vmatpush.bf16.msra.mxu3 %v559_v29  ;;  %v557_v31 = vld [vmem:[#allocation10 + $0x28] sm:$0xff]  ;;  %v556_v32 = vld [vmem:[#allocation10 + $0x20] sm:$0xff]  ;;  %v555_v33 = vld [vmem:[#allocation10 + $0x18] sm:$0xff] }
  0x20   :  { %310 = vmatpush.bf16.msra.mxu2 %v550_v14  ;;  %v571_v35 = vld [vmem:[%s838_s4] ss:$0 sm:$0xff]  ;;  %v554_v42 = vld [vmem:[#allocation10 + $0x10] sm:$0xff]  ;;  %v553_v43 = vld [vmem:[#allocation10 + $0x8] sm:$0xff] }
  0x21   :  { %226 = vmatpush.bf16.msra.mxu1 %v541_v7  ;;  %v552_v44 = vld [vmem:[#allocation10] sm:$0xff] }
  0x22   :  { %v572_v46 = vld [vmem:[%s840_s6] ss:$0 sm:$0xff] }
  0x23   :  { %393 = vmatpush.bf16.msra.mxu3 %v558_v30  ;;  %v573_v51 = vld [vmem:[%s842_s8] ss:$0 sm:$0xff] }
  0x24   :  { %311 = vmatpush.bf16.msra.mxu2 %v549_v15 }
  0x25   :  { %227 = vmatpush.bf16.msra.mxu1 %v540_v8 }
  0x27   :  { %394 = vmatpush.bf16.msra.mxu3 %v557_v31 }
  0x28   :  { %312 = vmatpush.bf16.msra.mxu2 %v548_v16 }
  0x29   :  { %228 = vmatpush.bf16.msra.mxu1 %v539_v9 }
  0x2b   :  { %395 = vmatpush.bf16.msra.mxu3 %v556_v32 }
  0x2c   :  { %313 = vmatpush.bf16.msra.mxu2 %v547_v25 }
  0x2d   :  { %229 = vmatpush.bf16.msra.mxu1 %v538_v10 }
  0x2f   :  { %396 = vmatpush.bf16.msra.mxu3 %v555_v33 }
  0x30   :  { %314 = vmatpush.bf16.msra.mxu2 %v546_v26 }
  0x31   :  { %230 = vmatpush.bf16.msra.mxu1 %v537_v11 }
  0x33   :  { %397 = vmatpush.bf16.msra.mxu3 %v554_v42 }
  0x34   :  { %315 = vmatpush.bf16.msra.mxu2 %v545_v27 }
  0x35   :  { %231 = vmatpush.bf16.msra.mxu1 %v536_v12 }
  0x37   :  { %398 = vmatpush.bf16.msra.mxu3 %v553_v43 }
  0x38   :  { %316 = vmatpush.bf16.msra.mxu2 %v544_v28 }
  0x3b   :  { %399 = vmatpush.bf16.msra.mxu3 %v552_v44 }
  0x9c   :  { %v148_v17 = vpop.f32.mrf.mxu0 }
  0x9d   :  { %v149_v19 = vadd.f32 %v570_v18, %v148_v17 }
  0x9f   :  { %v153_v22 = vmax.f32 %v149_v19, 0.0 }
  0xa4   :  { %v150_v20 = vpop.f32.mrf.mxu0 }
  0xa5   :  { %v151_v21 = vadd.f32 %v570_v18, %v150_v20 }
  0xa7   :  { %v154_v23 = vmax.f32 %v151_v21, 0.0 }
  0xa9   :  { %v155_v24 = vpack.c.bf16 %v154_v23, %v153_v22 }
  0xab   :  { %232 = vmatmul.bf16.vlgmr.msra.gmra.mxu1 %v155_v24 }
 0x128   :  { %v233_v34 = vpop.f32.mrf.mxu1 }
 0x129   :  { %v234_v36 = vadd.f32 %v571_v35, %v233_v34 }
 0x12b   :  { %v238_v39 = vmax.f32 %v234_v36, 0.0 }
 0x130   :  { %v235_v37 = vpop.f32.mrf.mxu1 }
 0x131   :  { %v236_v38 = vadd.f32 %v571_v35, %v235_v37 }
 0x133   :  { %v239_v40 = vmax.f32 %v236_v38, 0.0 }
 0x135   :  { %v240_v41 = vpack.c.bf16 %v239_v40, %v238_v39 }
 0x137   :  { %317 = vmatmul.bf16.vlgmr.msra.gmra.mxu2 %v240_v41 }
 0x1ba   :  { %v318_v45 = vpop.f32.mrf.mxu2 }
 0x1bb   :  { %v319_v48 = vadd.f32 %v572_v46, %v318_v45 }
 0x1c2   :  { %v320_v47 = vpop.f32.mrf.mxu2 }
 0x1c3   :  { %v321_v49 = vadd.f32 %v572_v46, %v320_v47 }
 0x1c5   :  { %v323_v50 = vpack.c.bf16 %v321_v49, %v319_v48 }
 0x1c7   :  { %400 = vmatmul.bf16.vlgmr.msra.gmra.mxu3 %v323_v50 }
 0x24a   :  { %v401_v52 = vpop.f32.mrf.mxu3 }
 0x24b   :  { %v402_v53 = vadd.f32 %v573_v51, %v401_v52 }
 0x24d   :  { %406 = vst [vmem:[#allocation11] sm:$0xff] %v402_v53 }
 0x252   :  { %v403_v54 = vpop.f32.mrf.mxu3 }
 0x253   :  { %v404_v55 = vadd.f32 %v573_v51, %v403_v54 }
 0x255   :  { %407 = vst [vmem:[#allocation11 + $0x8] sm:$0xff] %v404_v55 }
 0x256   :  { %420 = dma.vmem_to_hbm [thread:$0]  %s413_s19, 256, %s415_s1, [#allocation4], %s731_s27, %s731_s27, %s732_s28  }
 0x257   :  { %724 = dma.done.wait [#allocation4], 256  }
 0x258   :  { %725 = vsyncadd [#allocation4], 4294967040 }
 0x259   :  { %425 = vsyncpa [#allocation3], 1 }
 0x25a   :  { %426 = vsyncpa [#allocation6], 1 }
 0x25b   :  { %427 = vsyncpa [#allocation9], 1 }
 0x25c   :  { %428 = vsyncpa [#allocation4], 1 }

</bundles_post_ra>
